<compile_context>
chip_gen: v6e
topology: v6e:2x2x1
jax: 0.10.0
libtpu: 0.0.40
codegen_flags: <defaults>
</compile_context>

<pallas_src>
import functools
import math

import jax
import jax.numpy as jnp
from jax.experimental import pallas as pl
from jax.experimental.pallas import tpu as pltpu

_LANE = 128
_SUB = 8


def _maxout_kernel(x_ref, o_ref, *, arity):
    # x_ref: (Bt, arity, Rt, 128); o_ref: (Bt, Rt, 128)
    # Static Python-unrolled running maximum over arity slices: each slice is
    # a dense (Bt, Rt, 128) slab -> pure elementwise VPU max, no XLU reduce.
    acc = x_ref[:, 0]
    for a in range(1, arity):
        acc = jnp.maximum(acc, x_ref[:, a])
    o_ref[...] = acc


def _vmem_budget_bytes() -> int:
    """Per-chip VMEM limit we are willing to use (with headroom)."""
    try:
        cap = pltpu.get_tpu_info().vmem_capacity_bytes
    except Exception:
        cap = 64 << 20  # conservative default (v7x per-TC physical VMEM)
    # Use at most half of physical VMEM, capped at 48 MiB.
    return int(min(cap // 2, 48 << 20))


@functools.partial(jax.jit, static_argnames=("arity",))
def maxout(x, arity: int):
    """MaxOut forward. x: [B, C, *spatial] (NCHW for 4-D inputs)."""
    B = x.shape[0]
    C = x.shape[1]
    assert C % arity == 0, "channel dim must be divisible by arity"
    spatial = x.shape[2:]
    Cg = C // arity
    M = Cg * math.prod(spatial)  # host-side static arithmetic
    itemsize = jnp.dtype(x.dtype).itemsize

    # Flatten to [B, arity, M]; max over arity is exactly amax(dim=1) of the
    # contiguous [B, arity, C//arity, *spatial] view.
    x_flat = x.reshape(B, arity, M)

    # Pad M up to a multiple of 128 (only if needed) so each arity slice
    # becomes a dense (R, 128) lane-major slab.  Ragged R (not a multiple of
    # 8) is fine: either Rt == R (full-dim block) or Rt is a multiple of 32
    # with a pl.cdiv grid and Pallas masking the last partial block.
    Mp = ((M + _LANE - 1) // _LANE) * _LANE
    if Mp != M:
        x_flat = jnp.pad(x_flat, ((0, 0), (0, 0), (0, Mp - M)))
    R = Mp // _LANE
    x4 = x_flat.reshape(B, arity, R, _LANE)

    # ---- Block sizing from the VMEM budget ------------------------------
    vmem_limit = _vmem_budget_bytes()
    # Double-buffered (input + output) blocks must fit in half the limit.
    block_budget = vmem_limit // 2
    rows_budget = block_budget // (2 * (arity + 1) * _LANE * itemsize)
    # Multiple of 32 rows keeps the second-minor dim aligned for f32/bf16/int8.
    rows_budget = max(32, (rows_budget // 32) * 32)

    if R <= rows_budget:
        # Small M: take all rows of a batch element, block over batch too.
        Rt = R
        Bt = max(1, min(B, rows_budget // R))
        if B > 1:
            # Keep >=2 grid steps so both v7x TensorCores get work.
            Bt = min(Bt, pl.cdiv(B, 2))
    else:
        Bt = 1
        Rt = rows_budget

    grid = (pl.cdiv(B, Bt), pl.cdiv(R, Rt))

    out4 = pl.pallas_call(
        functools.partial(_maxout_kernel, arity=arity),
        out_shape=jax.ShapeDtypeStruct((B, R, _LANE), x.dtype),
        grid_spec=pltpu.PrefetchScalarGridSpec(
            num_scalar_prefetch=0,
            grid=grid,
            in_specs=[
                pl.BlockSpec((Bt, arity, Rt, _LANE), lambda b, r: (b, 0, r, 0))
            ],
            out_specs=pl.BlockSpec((Bt, Rt, _LANE), lambda b, r: (b, r, 0)),
        ),
        compiler_params=pltpu.CompilerParams(
            dimension_semantics=("parallel", "parallel"),
            vmem_limit_bytes=vmem_limit,
        ),
    )(x4)

    out_flat = out4.reshape(B, Mp)
    if Mp != M:
        out_flat = out_flat[:, :M]
    return out_flat.reshape((B, Cg) + spatial)


if __name__ == "__main__":
    key = jax.random.PRNGKey(0)
    key_a, key_b, key_c = jax.random.split(key, 3)

    # Primary case: NCHW conv activations (M multiple of 128 -> no pad path).
    arity = 2
    B, C, H, W = 2, 8, 16, 16
    x = jax.random.normal(key_a, (B, C, H, W), dtype=jnp.float32)
    out = jax.block_until_ready(maxout(x, arity))
    ref = jnp.max(x.reshape(B, arity, C // arity, H, W), axis=1)
    assert out.shape == (B, C // arity, H, W), out.shape
    assert jnp.allclose(out, ref), "mismatch vs reference (primary)"

    # Ragged case: M not a multiple of 128 (exercises pad/slice path), arity=3.
    x2 = jax.random.normal(key_b, (4, 6, 5, 7), dtype=jnp.float32)
    out2 = jax.block_until_ready(maxout(x2, 3))
    ref2 = jnp.max(x2.reshape(4, 3, 2, 5, 7), axis=1)
    assert out2.shape == (4, 2, 5, 7), out2.shape
    assert jnp.allclose(out2, ref2), "mismatch vs reference (ragged)"

    # No-spatial case: [B, C] only.
    x3 = jax.random.normal(key_c, (2, 32), dtype=jnp.float32)
    out3 = jax.block_until_ready(maxout(x3, 4))
    ref3 = jnp.max(x3.reshape(2, 4, 8), axis=1)
    assert out3.shape == (2, 8), out3.shape
    assert jnp.allclose(out3, ref3), "mismatch vs reference (2-D)"

    print("KERNEL_OK")
</pallas_src>

<mosaic_0001>
module attributes {stable_mosaic.version = 11 : i64} {
  func.func @_maxout_kernel(%arg0: i32, %arg1: i32, %arg2: memref<1x2x8x128xf32, #tpu.memory_space<vmem>>, %arg3: memref<1x8x128xf32, #tpu.memory_space<vmem>>) attributes {dimension_semantics = [#tpu.dimension_semantics<parallel>, #tpu.dimension_semantics<parallel>], iteration_bounds = array<i64: 2, 1>, scalar_prefetch = 0 : i64, scratch_operands = 0 : i64, tpu.core_type = #tpu.core_type<tc>, window_params = [{transform_indices = @transform_0, window_bounds = array<i64: 1, 2, 8, 128>}, {transform_indices = @transform_1, window_bounds = array<i64: 1, 8, 128>}]} {
    %c0 = arith.constant 0 : index
    %c0_0 = arith.constant 0 : index
    %c0_1 = arith.constant 0 : index
    %c0_2 = arith.constant 0 : index
    %0 = vector.load %arg2[%c0, %c0_0, %c0_1, %c0_2] : memref<1x2x8x128xf32, #tpu.memory_space<vmem>>, vector<1x1x8x128xf32>
    %1 = vector.shape_cast %0 : vector<1x1x8x128xf32> to vector<1x8x128xf32>
    %c0_3 = arith.constant 0 : index
    %c1 = arith.constant 1 : index
    %c0_4 = arith.constant 0 : index
    %c0_5 = arith.constant 0 : index
    %2 = vector.load %arg2[%c0_3, %c1, %c0_4, %c0_5] : memref<1x2x8x128xf32, #tpu.memory_space<vmem>>, vector<1x1x8x128xf32>
    %3 = vector.shape_cast %2 : vector<1x1x8x128xf32> to vector<1x8x128xf32>
    %4 = arith.maximumf %1, %3 : vector<1x8x128xf32>
    %c0_6 = arith.constant 0 : index
    %c0_7 = arith.constant 0 : index
    %c0_8 = arith.constant 0 : index
    %5 = vector.load %arg3[%c0_6, %c0_7, %c0_8] : memref<1x8x128xf32, #tpu.memory_space<vmem>>, vector<1x8x128xf32>
    tpu.vector_store %arg3[%c0_6, %c0_7, %c0_8], %4 {strides = array<i32>} : memref<1x8x128xf32, #tpu.memory_space<vmem>>, vector<1x8x128xf32>,
    return
  }
  func.func @transform_0(%arg0: i32, %arg1: i32) -> (i32, i32, i32, i32) {
    %c0_i32 = arith.constant 0 : i32
    %c0_i32_0 = arith.constant 0 : i32
    %c0_i32_1 = arith.constant 0 : i32
    return %arg0, %c0_i32, %arg1, %c0_i32_0 : i32, i32, i32, i32
  }
  func.func @transform_1(%arg0: i32, %arg1: i32) -> (i32, i32, i32) {
    %c0_i32 = arith.constant 0 : i32
    %c0_i32_0 = arith.constant 0 : i32
    return %arg0, %arg1, %c0_i32 : i32, i32, i32
  }
}

</mosaic_0001>

<bundles_post_ra>
// kernel: maxout.1
= control target key start
LH: loop header
LB: loop body
LE: loop exit
PB: predicated region body
PF: predicated region fallthrough
CT: control target
= control target key end

     0   :  { %s298_s6 = smov 0   ;;  %s300_s7 = smov 0   ;;  %s314_s0 = inlined_call_operand.vmem [shape: f32[2,2,8,128], index: 0, kind: input, shape index: {}]   ;;  %s315_s1 = inlined_call_operand.vmem [shape: f32[2,8,128], index: 1, kind: output, shape index: {}]  }
   0x1   :  { %s284_s8 = smov 0  }
   0x2 LB: > { %s23_s9 = sadd.s32 1, %s282_s7  ;;  %p232_p0 = scmp.ge.s32.totalorder %s286_s8, 1  ;;  %s286_s8 = sphi %s284_s8, %s11_s8   ;;  %s282_s7 = sphi %s300_s7, %s317_s7   ;;  %s278_s6 = sphi %s298_s6, %s316_s6  }
   0x3   : > { %p25_p1 = scmp.ge.s32.totalorder %s23_s9, 2  ;;  %p106_p2 = scmp.lt.s32.totalorder %s286_s8, 3 }
   0x5   : > { %s319_s9 = smov (%p25_p1, %s23_s9), 0  ;;  %p107_p3 = pnand %p232_p0, %p106_p2 }
   0x6   : > { %p131_p4 = scmp.lt.s32.totalorder (!%p107_p3), %s278_s6, 1 }
   0x7   : > { %110 = sbr.rel (%p107_p3) target bundleno = 19 (0x13), region = 24 }
   0xc   : > { %s321_s6 = smov (!%p131_p4, %s278_s6), 1 }
   0xd   : > { %s239_s10 = sshll.u32 %s321_s6, 4  ;;  %s235_s11 = sshll.u32 %s321_s6, 3 }
   0xe   : > { %s138_s14 = scalar_lea.vmem %s314_s0, %s239_s10  ;;  %s145_s17 = scalar_lea.vmem %s315_s1, %s235_s11 }
   0xf   : > { %v146_v0 = vld [vmem:[%s138_s14] sm:$0xff]  ;;  %v236_v1 = vld [vmem:[%s138_s14 + $0x8] sm:$0xff] }
  0x10   : > { %v149_v2 = vmax.f32 %v146_v0, %v236_v1 }
  0x12   : > { %150 = vst [vmem:[%s145_s17] sm:$0xff] %v149_v2 }
  0x13 PF: > { %s11_s8 = sadd.s32 1, %s286_s8   ;;  %s316_s6 = smov %s282_s7 }
  0x14   : > { %p8_p5 = scmp.ge.s32.totalorder %s11_s8, 4   ;;  %s317_s7 = smov %s319_s9 }
  0x16   :  { %10 = sbr.rel (!%p8_p5) target bundleno = 2 (0x2), region = 55 }

</bundles_post_ra>
